<compile_context>
chip_gen: v7x
topology: tpu7x:2x2x1
jax: 0.10.0
libtpu: 0.0.40
codegen_flags: <defaults>
</compile_context>

<pallas_src>
import jax
import jax.numpy as jnp
from jax.experimental import pallas as pl
from jax.experimental.pallas import tpu as pltpu

# ---------------- config (cfg.*) ----------------
BETA = 100.0                       # cfg.NETWORK.BETA
NUM_JOINTS = 8                     # cfg.NETWORK.NUM_JOINTS (small for demo)
GRID_SIZE = (800.0, 800.0, 800.0)  # cfg.PICT_STRUCT.GRID_SIZE (mm)
CUBE_SIZE = (8, 8, 8)              # cfg.PICT_STRUCT.CUBE_SIZE
N_VOXELS = CUBE_SIZE[0] * CUBE_SIZE[1] * CUBE_SIZE[2]   # 512


# ---------------- Pallas kernel ----------------
def pose_regression_kernel(block_valid_ref,   # scalar prefetch: (nb,) int32, 1 iff any valid in block
                           cubes_ref,         # (TB, J, N) f32
                           grids_ref,         # (TB, 3, N) f32  lane-dense grid coordinates
                           wcols_ref,         # (J, J, 1)  f32  wcols[k, j, 0] = BETA * W[j, k]
                           bias_ref,          # (1, J, 1)  f32  BETA * bias
                           out_ref):          # (TB, J, 3) f32
    i = pl.program_id(0)
    nj = cubes_ref.shape[1]

    @pl.when(block_valid_ref[i] > 0)
    def _compute():
        x = cubes_ref[...]                                            # (TB, J, N)

        # V2V stand-in: 1x1x1 pointwise conv over the joint axis, done as J
        # unrolled VPU scaled-adds (no MXU, no per-batch weight push).
        # s[b, j, n] = sum_k x[b, k, n] * (BETA*W)[j, k] + BETA*bias[j]
        # TODO(synk): full V2VNet (3D hourglass) definition was not provided.
        s = x[:, 0:1, :] * wcols_ref[0]                               # (TB, J, N)
        for k in range(1, nj):
            s = s + x[:, k:k + 1, :] * wcols_ref[k]
        s = s + bias_ref[...]                                         # broadcast (1, J, 1)

        # SoftArgmax: numerically-stable softmax over N, normalization deferred.
        m = jnp.max(s, axis=-1, keepdims=True)                        # (TB, J, 1)  XLU
        e = jnp.exp(s - m)                                            # (TB, J, N)  EUP
        denom = jnp.sum(e, axis=-1, keepdims=True)                    # (TB, J, 1)  XLU

        # Grid contraction as channel-wise VPU mul + lane reduction (avoids a
        # hidden transpose of the lane-dense grid and a 3-wide MXU matmul).
        g = grids_ref[...]                                            # (TB, 3, N)
        num = jnp.concatenate(
            [jnp.sum(e * g[:, c:c + 1, :], axis=-1, keepdims=True) for c in range(3)],
            axis=-1)                                                  # (TB, J, 3)

        out_ref[...] = num / denom                                    # exact normalize (tiny)

    @pl.when(block_valid_ref[i] == 0)
    def _all_invalid():
        # Output blocks are NOT zero-initialized: store zeros explicitly.
        out_ref[...] = jnp.zeros_like(out_ref)


# ---------------- grid sizing ----------------
def _cdiv(a, b):
    return -(-a // b)


def _tensorcores_per_chip():
    """Best-effort TC count: 2 on megacore chips (v4 / v5p / v7x), else 1."""
    try:
        kind = jax.local_devices()[0].device_kind.lower()
        if ("v7" in kind) or ("v4" in kind) or ("v5p" in kind):
            return 2
    except Exception:
        pass
    return 1


def _pick_tb(batch, cores, max_tb=128):
    """One step per TensorCore when the batch fits (1 step on v5e/v6e, 2 on
    v7x), capped at tb=128 (~5.6 MiB double-buffered VMEM, safe everywhere)."""
    if batch <= 0:
        return 1
    steps = min(batch, max(1, cores))
    return max(1, min(max_tb, _cdiv(batch, steps)))


# ---------------- wrapper ----------------
def pose_regression_net(cubes, grids, valid, w, bias, *, beta=BETA, tb=None):
    """cubes: (B, J, N) f32, grids: (B, N, 3) f32, valid: (B,) int -> (B, J, 3)."""
    B, J, N = cubes.shape
    if tb is None:
        tb = _pick_tb(B, _tensorcores_per_chip())
    nb = _cdiv(B, tb)
    b_pad = nb * tb

    # Lane-dense grids: (B, N, 3) -> (B, 3, N).  Pure layout plumbing.
    grids_t = jnp.transpose(grids, (0, 2, 1)).astype(jnp.float32)

    # Fold BETA into the pointwise weight / bias (softmax(beta*(Wx+b)) ==
    # softmax((beta*W)x + beta*b)).  Weight laid out as columns for cheap
    # in-kernel broadcasting: wcols[k, j, 0] = beta * W[j, k].
    wcols = jnp.transpose(beta * w.astype(jnp.float32)).reshape(J, J, 1)
    bias_b = (beta * bias.astype(jnp.float32)).reshape(1, J, 1)

    cubes = cubes.astype(jnp.float32)
    valid = valid.astype(jnp.int32)
    cubes_p, grids_p, valid_p = cubes, grids_t, valid
    if b_pad != B:
        pad = b_pad - B
        cubes_p = jnp.pad(cubes_p, ((0, pad), (0, 0), (0, 0)))
        grids_p = jnp.pad(grids_p, ((0, pad), (0, 0), (0, 0)))
        valid_p = jnp.pad(valid_p, ((0, pad),))        # padded rows are invalid

    # TODO(synk): for v7x with heavily-masked batches, compact/interleave valid
    # elements across the two parallel blocks for load balance.
    block_valid = jnp.max(valid_p.reshape(nb, tb), axis=1).astype(jnp.int32)   # (nb,)

    out = pl.pallas_call(
        pose_regression_kernel,
        out_shape=jax.ShapeDtypeStruct((b_pad, J, 3), jnp.float32),
        grid_spec=pltpu.PrefetchScalarGridSpec(
            num_scalar_prefetch=1,
            grid=(nb,),
            in_specs=[
                pl.BlockSpec((tb, J, N), lambda i, bv: (i, 0, 0)),   # cubes
                pl.BlockSpec((tb, 3, N), lambda i, bv: (i, 0, 0)),   # grids (lane-dense)
                pl.BlockSpec((J, J, 1), lambda i, bv: (0, 0, 0)),    # BETA * W, column layout
                pl.BlockSpec((1, J, 1), lambda i, bv: (0, 0, 0)),    # BETA * bias
            ],
            out_specs=pl.BlockSpec((tb, J, 3), lambda i, bv: (i, 0, 0)),
        ),
        compiler_params=pltpu.CompilerParams(
            dimension_semantics=("parallel",)),
    )(block_valid, cubes_p, grids_p, wcols, bias_b)

    out = out[:B]
    # pred[index] = ... semantics: NaN-safe mask, invalid rows stay exactly 0.
    return jnp.where((valid > 0)[:, None, None], out, 0.0)


# ---------------- JAX glue: ProjectLayer pieces ----------------
def compute_grid(box_size, box_center, n_bins):
    """Faithful re-implementation of ProjectLayer.compute_grid -> (N, 3)."""
    gx = jnp.linspace(-box_size[0] / 2.0, box_size[0] / 2.0, n_bins[0]) + box_center[0]
    gy = jnp.linspace(-box_size[1] / 2.0, box_size[1] / 2.0, n_bins[1]) + box_center[1]
    gz = jnp.linspace(-box_size[2] / 2.0, box_size[2] / 2.0, n_bins[2]) + box_center[2]
    mx, my, mz = jnp.meshgrid(gx, gy, gz, indexing="ij")
    return jnp.stack([mx.reshape(-1), my.reshape(-1), mz.reshape(-1)], axis=-1)


def project_heatmaps_to_cubes(all_heatmaps):
    """Deterministic stand-in for ProjectLayer's heatmap -> voxel sampling.

    TODO(synk): real ProjectLayer (camera projection + grid_sample) was not
    provided; each voxel samples a fixed heatmap location, averaged over views.
    """
    B, J, H, W = all_heatmaps[0].shape
    flat_idx = (jnp.arange(N_VOXELS) * (H * W)) // N_VOXELS
    cubes = jnp.zeros((B, J, N_VOXELS), jnp.float32)
    for hm in all_heatmaps:
        cubes = cubes + hm.reshape(B, J, H * W)[:, :, flat_idx]
    return cubes / float(len(all_heatmaps))


def init_params(key, num_joints):
    k1, k2 = jax.random.split(key)
    w = 0.1 * jax.random.normal(k1, (num_joints, num_joints), jnp.float32) \
        + jnp.eye(num_joints, dtype=jnp.float32)
    bias = 0.01 * jax.random.normal(k2, (num_joints, 1), jnp.float32)
    return w, bias


def pose_regression_reference(cubes, grids, valid, w, bias, beta=BETA):
    """Pure-JAX reference of the same forward (f32 / highest precision)."""
    hp = jax.lax.Precision.HIGHEST
    y = jnp.einsum('jk,bkn->bjn', w, cubes, precision=hp) + bias.reshape(1, -1, 1)
    p = jax.nn.softmax(beta * y, axis=-1)
    coords = jnp.einsum('bjn,bnc->bjc', p, grids, precision=hp)
    return coords * (valid > 0).astype(jnp.float32)[:, None, None]


if __name__ == "__main__":
    key = jax.random.PRNGKey(0)
    k_hm1, k_hm2, k_center, k_params = jax.random.split(key, 4)

    B, J, H, W = 4, NUM_JOINTS, 16, 16
    # two camera views of heatmaps (list, as in the PyTorch forward)
    all_heatmaps = [
        jax.nn.sigmoid(jax.random.normal(k_hm1, (B, J, H, W), jnp.float32)),
        jax.nn.sigmoid(jax.random.normal(k_hm2, (B, J, H, W), jnp.float32)),
    ]

    # grid_centers: (B, 5); column 3 is the validity flag.
    # batch 0 valid, batches 1-3 invalid.
    centers_xyz = 100.0 * jax.random.normal(k_center, (B, 3), jnp.float32)
    flags = jnp.array([[1.0], [-1.0], [-1.0], [-1.0]], jnp.float32)
    extra = jnp.zeros((B, 1), jnp.float32)
    grid_centers = jnp.concatenate([centers_xyz, flags, extra], axis=1)

    # ProjectLayer outputs
    cubes = project_heatmaps_to_cubes(all_heatmaps)                   # (B, J, N)
    grids = jax.vmap(
        lambda c: compute_grid(GRID_SIZE, c, CUBE_SIZE))(grid_centers[:, :3])  # (B, N, 3)
    valid = (grid_centers[:, 3] >= 0).astype(jnp.int32)               # (B,)

    w, bias = init_params(k_params, J)

    ref = pose_regression_reference(cubes, grids, valid, w, bias)

    # Default tiling (single step on 1-TC chips, two parallel steps on v7x).
    pred = pose_regression_net(cubes, grids, valid, w, bias)
    pred = jax.block_until_ready(pred)

    # Forced 2-block tiling to exercise both the mixed-block wrapper mask path
    # and the all-invalid pl.when zero-store path.
    pred2 = pose_regression_net(cubes, grids, valid, w, bias, tb=2)
    pred2 = jax.block_until_ready(pred2)

    for p in (pred, pred2):
        assert p.shape == (B, J, 3)
        assert bool(jnp.all(jnp.isfinite(p)))
        assert bool(jnp.all(p[1:] == 0.0))                 # invalid batches stay exactly zero
        assert float(jnp.max(jnp.abs(p - ref))) < 0.5      # mm; exact-divide, f32 ordering tol
    print("KERNEL_OK")
</pallas_src>

<mosaic_0001>
module attributes {stable_mosaic.version = 11 : i64} {
  func.func @pose_regression_kernel(%arg0: i32, %arg1: memref<1xi32, #tpu.memory_space<smem>>, %arg2: memref<4x8x512xf32, #tpu.memory_space<vmem>>, %arg3: memref<4x3x512xf32, #tpu.memory_space<vmem>>, %arg4: memref<8x8x1xf32, #tpu.memory_space<vmem>>, %arg5: memref<1x8x1xf32, #tpu.memory_space<vmem>>, %arg6: memref<4x8x3xf32, #tpu.memory_space<vmem>>) attributes {dimension_semantics = [#tpu.dimension_semantics<parallel>], iteration_bounds = array<i64: 1>, scalar_prefetch = 1 : i64, scratch_operands = 0 : i64, tpu.core_type = #tpu.core_type<tc>, window_params = [{transform_indices = @transform_0, window_bounds = array<i64: 4, 8, 512>}, {transform_indices = @transform_1, window_bounds = array<i64: 4, 3, 512>}, {pipeline_mode = #tpu.pipeline_mode<synchronous>, transform_indices = @transform_2, window_bounds = array<i64: 8, 8, 1>}, {pipeline_mode = #tpu.pipeline_mode<synchronous>, transform_indices = @transform_3, window_bounds = array<i64: 1, 8, 1>}, {transform_indices = @transform_4, window_bounds = array<i64: 4, 8, 3>}]} {
    %0 = arith.index_cast %arg0 : i32 to index
    %1 = memref.load %arg1[%0] : memref<1xi32, #tpu.memory_space<smem>>
    %c0_i32 = arith.constant 0 : i32
    %2 = arith.cmpi sgt, %1, %c0_i32 : i32
    %3 = arith.extui %2 : i1 to i32
    %c0_i32_0 = arith.constant 0 : i32
    %4 = arith.cmpi ne, %3, %c0_i32_0 : i32
    scf.if %4 {
      %c0 = arith.constant 0 : index
      %c0_3 = arith.constant 0 : index
      %c0_4 = arith.constant 0 : index
      %10 = vector.load %arg2[%c0, %c0_3, %c0_4] : memref<4x8x512xf32, #tpu.memory_space<vmem>>, vector<4x8x512xf32>
      %11 = vector.extract_strided_slice %10 {offsets = [0, 0, 0], sizes = [4, 1, 512], strides = [1, 1, 1]} : vector<4x8x512xf32> to vector<4x1x512xf32>
      %c0_5 = arith.constant 0 : index
      %c0_6 = arith.constant 0 : index
      %c0_7 = arith.constant 0 : index
      %12 = vector.load %arg4[%c0_5, %c0_6, %c0_7] : memref<8x8x1xf32, #tpu.memory_space<vmem>>, vector<1x8x1xf32>
      %13 = vector.shape_cast %12 : vector<1x8x1xf32> to vector<8x1xf32>
      %14 = vector.shape_cast %13 : vector<8x1xf32> to vector<1x8x1xf32>
      %15 = vector.broadcast %11 : vector<4x1x512xf32> to vector<4x8x512xf32>
      %16 = vector.broadcast %14 : vector<1x8x1xf32> to vector<4x8x512xf32>
      %17 = arith.mulf %15, %16 : vector<4x8x512xf32>
      %18 = vector.extract_strided_slice %10 {offsets = [0, 1, 0], sizes = [4, 1, 512], strides = [1, 1, 1]} : vector<4x8x512xf32> to vector<4x1x512xf32>
      %c1 = arith.constant 1 : index
      %c0_8 = arith.constant 0 : index
      %c0_9 = arith.constant 0 : index
      %19 = vector.load %arg4[%c1, %c0_8, %c0_9] : memref<8x8x1xf32, #tpu.memory_space<vmem>>, vector<1x8x1xf32>
      %20 = vector.shape_cast %19 : vector<1x8x1xf32> to vector<8x1xf32>
      %21 = vector.shape_cast %20 : vector<8x1xf32> to vector<1x8x1xf32>
      %22 = vector.broadcast %18 : vector<4x1x512xf32> to vector<4x8x512xf32>
      %23 = vector.broadcast %21 : vector<1x8x1xf32> to vector<4x8x512xf32>
      %24 = arith.mulf %22, %23 : vector<4x8x512xf32>
      %25 = arith.addf %17, %24 : vector<4x8x512xf32>
      %26 = vector.extract_strided_slice %10 {offsets = [0, 2, 0], sizes = [4, 1, 512], strides = [1, 1, 1]} : vector<4x8x512xf32> to vector<4x1x512xf32>
      %c2 = arith.constant 2 : index
      %c0_10 = arith.constant 0 : index
      %c0_11 = arith.constant 0 : index
      %27 = vector.load %arg4[%c2, %c0_10, %c0_11] : memref<8x8x1xf32, #tpu.memory_space<vmem>>, vector<1x8x1xf32>
      %28 = vector.shape_cast %27 : vector<1x8x1xf32> to vector<8x1xf32>
      %29 = vector.shape_cast %28 : vector<8x1xf32> to vector<1x8x1xf32>
      %30 = vector.broadcast %26 : vector<4x1x512xf32> to vector<4x8x512xf32>
      %31 = vector.broadcast %29 : vector<1x8x1xf32> to vector<4x8x512xf32>
      %32 = arith.mulf %30, %31 : vector<4x8x512xf32>
      %33 = arith.addf %25, %32 : vector<4x8x512xf32>
      %34 = vector.extract_strided_slice %10 {offsets = [0, 3, 0], sizes = [4, 1, 512], strides = [1, 1, 1]} : vector<4x8x512xf32> to vector<4x1x512xf32>
      %c3 = arith.constant 3 : index
      %c0_12 = arith.constant 0 : index
      %c0_13 = arith.constant 0 : index
      %35 = vector.load %arg4[%c3, %c0_12, %c0_13] : memref<8x8x1xf32, #tpu.memory_space<vmem>>, vector<1x8x1xf32>
      %36 = vector.shape_cast %35 : vector<1x8x1xf32> to vector<8x1xf32>
      %37 = vector.shape_cast %36 : vector<8x1xf32> to vector<1x8x1xf32>
      %38 = vector.broadcast %34 : vector<4x1x512xf32> to vector<4x8x512xf32>
      %39 = vector.broadcast %37 : vector<1x8x1xf32> to vector<4x8x512xf32>
      %40 = arith.mulf %38, %39 : vector<4x8x512xf32>
      %41 = arith.addf %33, %40 : vector<4x8x512xf32>
      %42 = vector.extract_strided_slice %10 {offsets = [0, 4, 0], sizes = [4, 1, 512], strides = [1, 1, 1]} : vector<4x8x512xf32> to vector<4x1x512xf32>
      %c4 = arith.constant 4 : index
      %c0_14 = arith.constant 0 : index
      %c0_15 = arith.constant 0 : index
      %43 = vector.load %arg4[%c4, %c0_14, %c0_15] : memref<8x8x1xf32, #tpu.memory_space<vmem>>, vector<1x8x1xf32>
      %44 = vector.shape_cast %43 : vector<1x8x1xf32> to vector<8x1xf32>
      %45 = vector.shape_cast %44 : vector<8x1xf32> to vector<1x8x1xf32>
      %46 = vector.broadcast %42 : vector<4x1x512xf32> to vector<4x8x512xf32>
      %47 = vector.broadcast %45 : vector<1x8x1xf32> to vector<4x8x512xf32>
      %48 = arith.mulf %46, %47 : vector<4x8x512xf32>
      %49 = arith.addf %41, %48 : vector<4x8x512xf32>
      %50 = vector.extract_strided_slice %10 {offsets = [0, 5, 0], sizes = [4, 1, 512], strides = [1, 1, 1]} : vector<4x8x512xf32> to vector<4x1x512xf32>
      %c5 = arith.constant 5 : index
      %c0_16 = arith.constant 0 : index
      %c0_17 = arith.constant 0 : index
      %51 = vector.load %arg4[%c5, %c0_16, %c0_17] : memref<8x8x1xf32, #tpu.memory_space<vmem>>, vector<1x8x1xf32>
      %52 = vector.shape_cast %51 : vector<1x8x1xf32> to vector<8x1xf32>
      %53 = vector.shape_cast %52 : vector<8x1xf32> to vector<1x8x1xf32>
      %54 = vector.broadcast %50 : vector<4x1x512xf32> to vector<4x8x512xf32>
      %55 = vector.broadcast %53 : vector<1x8x1xf32> to vector<4x8x512xf32>
      %56 = arith.mulf %54, %55 : vector<4x8x512xf32>
      %57 = arith.addf %49, %56 : vector<4x8x512xf32>
      %58 = vector.extract_strided_slice %10 {offsets = [0, 6, 0], sizes = [4, 1, 512], strides = [1, 1, 1]} : vector<4x8x512xf32> to vector<4x1x512xf32>
      %c6 = arith.constant 6 : index
      %c0_18 = arith.constant 0 : index
      %c0_19 = arith.constant 0 : index
      %59 = vector.load %arg4[%c6, %c0_18, %c0_19] : memref<8x8x1xf32, #tpu.memory_space<vmem>>, vector<1x8x1xf32>
      %60 = vector.shape_cast %59 : vector<1x8x1xf32> to vector<8x1xf32>
      %61 = vector.shape_cast %60 : vector<8x1xf32> to vector<1x8x1xf32>
      %62 = vector.broadcast %58 : vector<4x1x512xf32> to vector<4x8x512xf32>
      %63 = vector.broadcast %61 : vector<1x8x1xf32> to vector<4x8x512xf32>
      %64 = arith.mulf %62, %63 : vector<4x8x512xf32>
      %65 = arith.addf %57, %64 : vector<4x8x512xf32>
      %66 = vector.extract_strided_slice %10 {offsets = [0, 7, 0], sizes = [4, 1, 512], strides = [1, 1, 1]} : vector<4x8x512xf32> to vector<4x1x512xf32>
      %c7 = arith.constant 7 : index
      %c0_20 = arith.constant 0 : index
      %c0_21 = arith.constant 0 : index
      %67 = vector.load %arg4[%c7, %c0_20, %c0_21] : memref<8x8x1xf32, #tpu.memory_space<vmem>>, vector<1x8x1xf32>
      %68 = vector.shape_cast %67 : vector<1x8x1xf32> to vector<8x1xf32>
      %69 = vector.shape_cast %68 : vector<8x1xf32> to vector<1x8x1xf32>
      %70 = vector.broadcast %66 : vector<4x1x512xf32> to vector<4x8x512xf32>
      %71 = vector.broadcast %69 : vector<1x8x1xf32> to vector<4x8x512xf32>
      %72 = arith.mulf %70, %71 : vector<4x8x512xf32>
      %73 = arith.addf %65, %72 : vector<4x8x512xf32>
      %c0_22 = arith.constant 0 : index
      %c0_23 = arith.constant 0 : index
      %c0_24 = arith.constant 0 : index
      %74 = vector.load %arg5[%c0_22, %c0_23, %c0_24] : memref<1x8x1xf32, #tpu.memory_space<vmem>>, vector<1x8x1xf32>
      %75 = vector.broadcast %74 : vector<1x8x1xf32> to vector<4x8x512xf32>
      %76 = arith.addf %73, %75 : vector<4x8x512xf32>
      %cst = arith.constant dense<0xFF800000> : vector<4x8xf32>
      %77 = vector.multi_reduction <maximumf>, %76, %cst [2] : vector<4x8x512xf32> to vector<4x8xf32>
      %78 = vector.shape_cast %77 : vector<4x8xf32> to vector<4x8x1xf32>
      %79 = vector.broadcast %78 : vector<4x8x1xf32> to vector<4x8x512xf32>
      %80 = arith.subf %76, %79 : vector<4x8x512xf32>
      %81 = math.exp %80 : vector<4x8x512xf32>
      %cst_25 = arith.constant dense<0.000000e+00> : vector<4x8xf32>
      %82 = vector.multi_reduction <add>, %81, %cst_25 [2] : vector<4x8x512xf32> to vector<4x8xf32>
      %83 = vector.shape_cast %82 : vector<4x8xf32> to vector<4x8x1xf32>
      %c0_26 = arith.constant 0 : index
      %c0_27 = arith.constant 0 : index
      %c0_28 = arith.constant 0 : index
      %84 = vector.load %arg3[%c0_26, %c0_27, %c0_28] : memref<4x3x512xf32, #tpu.memory_space<vmem>>, vector<4x3x512xf32>
      %85 = vector.extract_strided_slice %84 {offsets = [0, 0, 0], sizes = [4, 1, 512], strides = [1, 1, 1]} : vector<4x3x512xf32> to vector<4x1x512xf32>
      %86 = vector.broadcast %85 : vector<4x1x512xf32> to vector<4x8x512xf32>
      %87 = arith.mulf %81, %86 : vector<4x8x512xf32>
      %cst_29 = arith.constant dense<0.000000e+00> : vector<4x8xf32>
      %88 = vector.multi_reduction <add>, %87, %cst_29 [2] : vector<4x8x512xf32> to vector<4x8xf32>
      %89 = vector.shape_cast %88 : vector<4x8xf32> to vector<4x8x1xf32>
      %90 = vector.extract_strided_slice %84 {offsets = [0, 1, 0], sizes = [4, 1, 512], strides = [1, 1, 1]} : vector<4x3x512xf32> to vector<4x1x512xf32>
      %91 = vector.broadcast %90 : vector<4x1x512xf32> to vector<4x8x512xf32>
      %92 = arith.mulf %81, %91 : vector<4x8x512xf32>
      %cst_30 = arith.constant dense<0.000000e+00> : vector<4x8xf32>
      %93 = vector.multi_reduction <add>, %92, %cst_30 [2] : vector<4x8x512xf32> to vector<4x8xf32>
      %94 = vector.shape_cast %93 : vector<4x8xf32> to vector<4x8x1xf32>
      %95 = vector.extract_strided_slice %84 {offsets = [0, 2, 0], sizes = [4, 1, 512], strides = [1, 1, 1]} : vector<4x3x512xf32> to vector<4x1x512xf32>
      %96 = vector.broadcast %95 : vector<4x1x512xf32> to vector<4x8x512xf32>
      %97 = arith.mulf %81, %96 : vector<4x8x512xf32>
      %cst_31 = arith.constant dense<0.000000e+00> : vector<4x8xf32>
      %98 = vector.multi_reduction <add>, %97, %cst_31 [2] : vector<4x8x512xf32> to vector<4x8xf32>
      %99 = vector.shape_cast %98 : vector<4x8xf32> to vector<4x8x1xf32>
      %100 = tpu.concatenate %89, %94, %99 in 2 : vector<4x8x1xf32>, vector<4x8x1xf32>, vector<4x8x1xf32> -> vector<4x8x3xf32>
      %101 = vector.broadcast %83 : vector<4x8x1xf32> to vector<4x8x3xf32>
      %102 = arith.divf %100, %101 : vector<4x8x3xf32>
      %c0_32 = arith.constant 0 : index
      %c0_33 = arith.constant 0 : index
      %c0_34 = arith.constant 0 : index
      %103 = vector.load %arg6[%c0_32, %c0_33, %c0_34] : memref<4x8x3xf32, #tpu.memory_space<vmem>>, vector<4x8x3xf32>
      tpu.vector_store %arg6[%c0_32, %c0_33, %c0_34], %102 {strides = array<i32>} : memref<4x8x3xf32, #tpu.memory_space<vmem>>, vector<4x8x3xf32>,
    } else {
    }
    %5 = arith.index_cast %arg0 : i32 to index
    %6 = memref.load %arg1[%5] : memref<1xi32, #tpu.memory_space<smem>>
    %c0_i32_1 = arith.constant 0 : i32
    %7 = arith.cmpi eq, %6, %c0_i32_1 : i32
    %8 = arith.extui %7 : i1 to i32
    %c0_i32_2 = arith.constant 0 : i32
    %9 = arith.cmpi ne, %8, %c0_i32_2 : i32
    scf.if %9 {
      %cst = arith.constant 0.000000e+00 : f32
      %10 = vector.broadcast %cst : f32 to vector<4x8x3xf32>
      %c0 = arith.constant 0 : index
      %c0_3 = arith.constant 0 : index
      %c0_4 = arith.constant 0 : index
      %11 = vector.load %arg6[%c0, %c0_3, %c0_4] : memref<4x8x3xf32, #tpu.memory_space<vmem>>, vector<4x8x3xf32>
      tpu.vector_store %arg6[%c0, %c0_3, %c0_4], %10 {strides = array<i32>} : memref<4x8x3xf32, #tpu.memory_space<vmem>>, vector<4x8x3xf32>,
    } else {
    }
    return
  }
  func.func @transform_0(%arg0: i32, %arg1: memref<1xi32, #tpu.memory_space<smem>>) -> (i32, i32, i32) {
    %c0_i32 = arith.constant 0 : i32
    %c0_i32_0 = arith.constant 0 : i32
    %c0_i32_1 = arith.constant 0 : i32
    return %arg0, %c0_i32, %c0_i32_0 : i32, i32, i32
  }
  func.func @transform_1(%arg0: i32, %arg1: memref<1xi32, #tpu.memory_space<smem>>) -> (i32, i32, i32) {
    %c0_i32 = arith.constant 0 : i32
    %c0_i32_0 = arith.constant 0 : i32
    %c0_i32_1 = arith.constant 0 : i32
    return %arg0, %c0_i32, %c0_i32_0 : i32, i32, i32
  }
  func.func @transform_2(%arg0: i32, %arg1: memref<1xi32, #tpu.memory_space<smem>>) -> (i32, i32, i32) {
    %c0_i32 = arith.constant 0 : i32
    %c0_i32_0 = arith.constant 0 : i32
    %c0_i32_1 = arith.constant 0 : i32
    %c0_i32_2 = arith.constant 0 : i32
    return %c0_i32, %c0_i32_0, %c0_i32_1 : i32, i32, i32
  }
  func.func @transform_3(%arg0: i32, %arg1: memref<1xi32, #tpu.memory_space<smem>>) -> (i32, i32, i32) {
    %c0_i32 = arith.constant 0 : i32
    %c0_i32_0 = arith.constant 0 : i32
    %c0_i32_1 = arith.constant 0 : i32
    %c0_i32_2 = arith.constant 0 : i32
    return %c0_i32, %c0_i32_0, %c0_i32_1 : i32, i32, i32
  }
  func.func @transform_4(%arg0: i32, %arg1: memref<1xi32, #tpu.memory_space<smem>>) -> (i32, i32, i32) {
    %c0_i32 = arith.constant 0 : i32
    %c0_i32_0 = arith.constant 0 : i32
    %c0_i32_1 = arith.constant 0 : i32
    return %arg0, %c0_i32, %c0_i32_0 : i32, i32, i32
  }
}

</mosaic_0001>

<bundles_post_ra>
// kernel: tpu_custom_call.1
= control target key start
LH: loop header
LB: loop body
LE: loop exit
PB: predicated region body
PF: predicated region fallthrough
CT: control target
= control target key end

     0   :  { %s2985_s0 = inlined_call_operand.<no memory space> [shape: s32[1], index: 0, kind: input, shape index: {}]   ;;  %s2986_s1 = inlined_call_operand.vmem [shape: f32[4,8,512], index: 1, kind: input, shape index: {}]   ;;  %s2987_s2 = inlined_call_operand.vmem [shape: f32[4,3,512], index: 2, kind: input, shape index: {}]   ;;  %s2988_s3 = inlined_call_operand.vmem [shape: f32[8,8,1], index: 3, kind: input, shape index: {}]   ;;  %s2989_s4 = inlined_call_operand.vmem [shape: f32[1,8,1], index: 4, kind: input, shape index: {}]   ;;  %s2990_s5 = inlined_call_operand.vmem [shape: f32[4,8,3], index: 5, kind: output, shape index: {}]  }
   0x1   :  { %10 = sst [smem:[#allocation3]] %s2985_s0  ;;  %p1550_p0 = scmp.le.s32.totalorder %s2985_s0, 0 }
   0x3   :  { %23 = sbr.rel (%p1550_p0) target bundleno = 575 (0x23f), region = 21 }
   0xa   :  { %v1552_v0 = vld [vmem:[%s2988_s3 + $0x10] sm:$0xff]  ;;  %v40_v1 = vld [vmem:[%s2988_s3] sm:$0xff]  ;;  %v1603_v2 = vmov 0   ;;  %v1553_v3 = vld [vmem:[%s2988_s3 + $0x18] sm:$0xff]  ;;  %v41_v10 = vlaneseq  ;;  %vm1513_vm0 = vcmask 7168   ;;  %vm1518_vm1 = vcmask 15360  }
   0xb   :  { %1562 = vset.pattern.permute.xlu1 %v1603_v2  ;;  %1561 = vset.pattern.permute.xlu0 %v1603_v2  ;;  %v1551_v4 = vld [vmem:[%s2988_s3 + $0x8] sm:$0xff]  ;;  %v1554_v6 = vld [vmem:[%s2988_s3 + $0x20] sm:$0xff]  ;;  %v1557_v7 = vld [vmem:[%s2988_s3 + $0x38] sm:$0xff]  ;;  %vm1531_vm2 = vcmask 23552  }
   0xc   :  { %297 = vperm.xlu1 %1562, %v1552_v0   ;;  %107 = vperm.xlu0 %1561, %v40_v1   ;;  %v1555_v5 = vld [vmem:[%s2988_s3 + $0x28] sm:$0xff]  ;;  %v1556_v8 = vld [vmem:[%s2988_s3 + $0x30] sm:$0xff]  ;;  %v847_v9 = vld [vmem:[%s2989_s4] sm:$0xff]  ;;  %v42_v11 = vshrl.u32 %v41_v10, 7 }
   0xd   :  { %v1673_v13 = vld [vmem:[%s2986_s1 + $0x20] sm:$0xff]  ;;  %v1678_v14 = vld [vmem:[%s2986_s1 + $0x28] sm:$0xff]  ;;  %v1683_v15 = vld [vmem:[%s2986_s1 + $0x30] sm:$0xff] }
   0xe   :  { %v1668_v12 = vsub.s32 0, %v42_v11  ;;  %v1685_v16 = vsub.s32 1, %v42_v11  ;;  %v1690_v17 = vld [vmem:[%s2986_s1 + $0x38] sm:$0xff]  ;;  %v1692_v18 = vsub.s32 2, %v42_v11  ;;  %v1694_v19 = vsub.s32 3, %v42_v11  ;;  %v1713_v27 = vld [vmem:[%s2986_s1] sm:$0xff] }
   0xf   :  { %v1721_v31 = vsub.s32 4, %v42_v11  ;;  %v1726_v32 = vld [vmem:[%s2986_s1 + $0x8] sm:$0xff]  ;;  %v1731_v33 = vld [vmem:[%s2986_s1 + $0x10] sm:$0xff]  ;;  %v1736_v34 = vld [vmem:[%s2986_s1 + $0x18] sm:$0xff]  ;;  %v1744_v38 = vsub.s32 5, %v42_v11  ;;  %v1768_v50 = vsub.s32 6, %v42_v11 }
  0x10   :  { %400 = vperm.xlu1 %1562, %v1553_v3   ;;  %194 = vperm.xlu0 %1561, %v1551_v4   ;;  %v60_v20 = vrot.slane %v1673_v13, %v1668_v12  ;;  %v64_v21 = vrot.slane %v1678_v14, %v1668_v12  ;;  %v68_v22 = vrot.slane %v1683_v15, %v1668_v12  ;;  %v1776_v54 = vsub.s32 7, %v42_v11  ;;  %v1805_v3 = vld [vmem:[%s2986_s1 + $0x40] sm:$0xff]  ;;  %v1810_v4 = vld [vmem:[%s2986_s1 + $0x48] sm:$0xff]  ;;  %v1828_v10 = vld [vmem:[%s2986_s1 + $0x58] sm:$0xff] }
  0x11   :  { %v72_v23 = vrot.slane %v1690_v17, %v1668_v12  ;;  %v147_v24 = vrot.slane %v1673_v13, %v1685_v16  ;;  %v151_v25 = vrot.slane %v1678_v14, %v1685_v16  ;;  %v155_v26 = vrot.slane %v1683_v15, %v1685_v16  ;;  %v1875_v1 = vld [vmem:[%s2986_s1 + $0x70] sm:$0xff]  ;;  %v1912_v2 = vld [vmem:[%s2986_s1 + $0x78] sm:$0xff] }
  0x12   :  { %v159_v28 = vrot.slane %v1690_v17, %v1685_v16  ;;  %v250_v29 = vrot.slane %v1673_v13, %v1692_v18  ;;  %v254_v30 = vrot.slane %v1678_v14, %v1692_v18  ;;  %v258_v35 = vrot.slane %v1683_v15, %v1692_v18  ;;  %2998 = vst [vmem:[#allocation5_spill] sm:$0xff] %v1875_v1 }
  0x13   :  { %v262_v36 = vrot.slane %v1690_v17, %v1692_v18  ;;  %v353_v37 = vrot.slane %v1673_v13, %v1694_v19  ;;  %v357_v39 = vrot.slane %v1678_v14, %v1694_v19  ;;  %v361_v40 = vrot.slane %v1683_v15, %v1694_v19  ;;  %2999 = vst [vmem:[#allocation6_spill] sm:$0xff] %v1912_v2 }
  0x14   :  { %606 = vperm.xlu1 %1562, %v1555_v5   ;;  %503 = vperm.xlu0 %1561, %v1554_v6   ;;  %v365_v41 = vrot.slane %v1690_v17, %v1694_v19  ;;  %v44_v42 = vrot.slane %v1713_v27, %v1668_v12  ;;  %v48_v43 = vrot.slane %v1726_v32, %v1668_v12  ;;  %v1815_v5 = vld [vmem:[%s2986_s1 + $0x50] sm:$0xff] }
  0x15   :  { %v52_v44 = vrot.slane %v1731_v33, %v1668_v12  ;;  %v56_v45 = vrot.slane %v1736_v34, %v1668_v12  ;;  %v131_v46 = vrot.slane %v1713_v27, %v1685_v16  ;;  %v135_v57 = vrot.slane %v1726_v32, %v1685_v16 }
  0x16   :  { %v139_v58 = vrot.slane %v1731_v33, %v1685_v16  ;;  %v234_v60 = vrot.slane %v1713_v27, %v1692_v18  ;;  %v238_v61 = vrot.slane %v1726_v32, %v1692_v18  ;;  %v242_v62 = vrot.slane %v1731_v33, %v1692_v18 }
  0x17   :  { %v246_v11 = vrot.slane %v1736_v34, %v1692_v18  ;;  %v3011_v1 = vrot.slane %v1683_v15, %v1768_v50 }
  0x18   :  { %812 = vperm.xlu1 %1562, %v1557_v7   ;;  %709 = vperm.xlu0 %1561, %v1556_v8   ;;  %v1865_v7 = vld [vmem:[%s2986_s1 + $0x60] sm:$0xff] }
  0x1c   :  { %850 = vperm.xlu0 %1561, %v847_v9   ;;  %v1870_v9 = vld [vmem:[%s2986_s1 + $0x68] sm:$0xff] }
  0x1d   :  { %2997 = vst [vmem:[#allocation4_spill] sm:$0xff] %v1870_v9 }
  0x8b   :  { %v2010_v52 = vpop.permute.xlu1 %297  ;;  %v2012_v53 = vpop.permute.xlu0 %107 }
  0x8c   :  { %v114_v56 = vmul.f32 %v2012_v53, %v60_v20  ;;  %v115_v6 = vmul.f32 %v2012_v53, %v64_v21  ;;  %v116_v8 = vmul.f32 %v2012_v53, %v68_v22  ;;  %v117_v0 = vmul.f32 %v2012_v53, %v72_v23 }
  0x8d   :  { %v304_v20 = vmul.f32 %v2010_v52, %v250_v29  ;;  %v305_v21 = vmul.f32 %v2010_v52, %v254_v30  ;;  %v306_v22 = vmul.f32 %v2010_v52, %v258_v35  ;;  %v307_v23 = vmul.f32 %v2010_v52, %v262_v36 }
  0x8e   :  { %v2058_v29 = vmul.f32 %v2012_v53, %v44_v42  ;;  %v2064_v30 = vmul.f32 %v2012_v53, %v48_v43  ;;  %v2070_v35 = vmul.f32 %v2012_v53, %v52_v44  ;;  %v2076_v36 = vmul.f32 %v2012_v53, %v56_v45 }
  0x8f   :  { %v2078_v42 = vpop.permute.xlu1 %400  ;;  %v2080_v55 = vpop.permute.xlu0 %194  ;;  %v2086_v43 = vmul.f32 %v2010_v52, %v234_v60  ;;  %v2092_v44 = vmul.f32 %v2010_v52, %v238_v61  ;;  %v2098_v45 = vmul.f32 %v2010_v52, %v242_v62  ;;  %v2104_v63 = vmul.f32 %v2010_v52, %v246_v11 }
  0x90   :  { %v201_v60 = vmul.f32 %v2080_v55, %v147_v24  ;;  %v202_v61 = vmul.f32 %v2080_v55, %v151_v25  ;;  %v203_v62 = vmul.f32 %v2080_v55, %v155_v26  ;;  %v204_v11 = vmul.f32 %v2080_v55, %v159_v28 }
  0x91   :  { %v407_v24 = vmul.f32 %v2078_v42, %v353_v37  ;;  %v408_v25 = vmul.f32 %v2078_v42, %v357_v39  ;;  %v409_v26 = vmul.f32 %v2078_v42, %v361_v40  ;;  %v410_v28 = vmul.f32 %v2078_v42, %v365_v41 }
  0x92   :  { %v217_v51 = vadd.f32 %v201_v60, %v114_v56  ;;  %v218_v49 = vadd.f32 %v202_v61, %v115_v6  ;;  %v219_v48 = vadd.f32 %v203_v62, %v116_v8  ;;  %v220_v47 = vadd.f32 %v204_v11, %v117_v0 }
  0x93   :  { %v2138_v37 = vpop.permute.xlu1 %606  ;;  %v2140_v59 = vpop.permute.xlu0 %503  ;;  %v197_v39 = vmul.f32 %v2080_v55, %v131_v46  ;;  %v198_v40 = vmul.f32 %v2080_v55, %v135_v57  ;;  %v199_v41 = vmul.f32 %v2080_v55, %v139_v58  ;;  %v3000_v56 = vrot.slane %v1736_v34, %v1685_v16 }
  0x94   :  { %v320_v6 = vadd.f32 %v304_v20, %v217_v51  ;;  %v321_v8 = vadd.f32 %v305_v21, %v218_v49  ;;  %v322_v60 = vadd.f32 %v306_v22, %v219_v48  ;;  %v323_v61 = vadd.f32 %v307_v23, %v220_v47 }
  0x95   :  { %v200_v0 = vmul.f32 %v2080_v55, %v3000_v56  ;;  %v3001_v46 = vrot.slane %v1673_v13, %v1721_v31  ;;  %v3002_v57 = vrot.slane %v1678_v14, %v1721_v31  ;;  %v3003_v58 = vrot.slane %v1683_v15, %v1721_v31 }
  0x96   :  { %v3004_v49 = vrot.slane %v1690_v17, %v1721_v31  ;;  %v423_v48 = vadd.f32 %v407_v24, %v320_v6  ;;  %v424_v51 = vadd.f32 %v408_v25, %v321_v8  ;;  %v425_v20 = vadd.f32 %v409_v26, %v322_v60 }
  0x97   :  { %v510_v62 = vmul.f32 %v2140_v59, %v3001_v46  ;;  %v511_v11 = vmul.f32 %v2140_v59, %v3002_v57  ;;  %v512_v2 = vmul.f32 %v2140_v59, %v3003_v58  ;;  %v426_v21 = vadd.f32 %v410_v28, %v323_v61  ;;  %v2174_v22 = vpop.permute.xlu0 %709  ;;  %v2192_v28 = vpop.permute.xlu1 %812 }
  0x98   :  { %v513_v47 = vmul.f32 %v2140_v59, %v3004_v49  ;;  %v3005_v23 = vrot.slane %v1673_v13, %v1744_v38  ;;  %v3006_v46 = vrot.slane %v1678_v14, %v1744_v38  ;;  %v3007_v58 = vrot.slane %v1683_v15, %v1744_v38 }
  0x99   :  { %v3008_v25 = vrot.slane %v1690_v17, %v1744_v38  ;;  %v526_v6 = vadd.f32 %v510_v62, %v423_v48  ;;  %v527_v8 = vadd.f32 %v511_v11, %v424_v51  ;;  %v528_v60 = vadd.f32 %v512_v2, %v425_v20 }
  0x9a   :  { %v613_v56 = vmul.f32 %v2138_v37, %v3005_v23  ;;  %v614_v57 = vmul.f32 %v2138_v37, %v3006_v46  ;;  %v615_v24 = vmul.f32 %v2138_v37, %v3007_v58  ;;  %v529_v61 = vadd.f32 %v513_v47, %v426_v21 }
  0x9b   :  { %v616_v26 = vmul.f32 %v2138_v37, %v3008_v25  ;;  %v3009_v49 = vrot.slane %v1673_v13, %v1768_v50  ;;  %v3010_v46 = vrot.slane %v1678_v14, %v1768_v50  ;;  %v718_v25 = vmul.f32 %v2174_v22, %v3011_v1 }
  0x9c   :  { %v3012_v62 = vrot.slane %v1690_v17, %v1768_v50  ;;  %v629_v11 = vadd.f32 %v613_v56, %v526_v6  ;;  %v630_v47 = vadd.f32 %v614_v57, %v527_v8  ;;  %v631_v48 = vadd.f32 %v615_v24, %v528_v60 }
  0x9d   :  { %v716_v23 = vmul.f32 %v2174_v22, %v3009_v49  ;;  %v717_v58 = vmul.f32 %v2174_v22, %v3010_v46  ;;  %v632_v51 = vadd.f32 %v616_v26, %v529_v61  ;;  %v3013_v20 = vrot.slane %v1673_v13, %v1776_v54 }
  0x9e   :  { %v719_v2 = vmul.f32 %v2174_v22, %v3012_v62  ;;  %v3014_v49 = vrot.slane %v1678_v14, %v1776_v54  ;;  %v3015_v1 = vrot.slane %v1683_v15, %v1776_v54  ;;  %v3016_v56 = vrot.slane %v1690_v17, %v1776_v54 }
  0x9f   :  { %v819_v21 = vmul.f32 %v2192_v28, %v3013_v20  ;;  %v732_v24 = vadd.f32 %v716_v23, %v629_v11  ;;  %v733_v26 = vadd.f32 %v717_v58, %v630_v47  ;;  %v734_v13 = vadd.f32 %v718_v25, %v631_v48 }
  0xa0   :  { %v820_v46 = vmul.f32 %v2192_v28, %v3014_v49  ;;  %v821_v9 = vmul.f32 %v2192_v28, %v3015_v1  ;;  %v822_v57 = vmul.f32 %v2192_v28, %v3016_v56  ;;  %v735_v6 = vadd.f32 %v719_v2, %v632_v51  ;;  %v2230_v1 = vpop.permute.xlu0 %850 }
  0xa1   :  { %v213_v8 = vadd.f32 %v197_v39, %v2058_v29  ;;  %v214_v14 = vadd.f32 %v198_v40, %v2064_v30  ;;  %v215_v60 = vadd.f32 %v199_v41, %v2070_v35  ;;  %v216_v61 = vadd.f32 %v200_v0, %v2076_v36 }
  0xa2   :  { %v835_v15 = vadd.f32 %v819_v21, %v732_v24  ;;  %v836_v62 = vadd.f32 %v820_v46, %v733_v26  ;;  %v837_v20 = vadd.f32 %v821_v9, %v734_v13  ;;  %v838_v49 = vadd.f32 %v822_v57, %v735_v6 }
  0xa3   :  { %v316_v17 = vadd.f32 %v2086_v43, %v213_v8  ;;  %v317_v23 = vadd.f32 %v2092_v44, %v214_v14  ;;  %v318_v58 = vadd.f32 %v2098_v45, %v215_v60  ;;  %v319_v29 = vadd.f32 %v2104_v63, %v216_v61 }
  0xa4   :  { %v2237_v30 = vadd.f32 %v2230_v1, %v835_v15  ;;  %v2240_v35 = vadd.f32 %v2230_v1, %v836_v62  ;;  %v2243_v36 = vadd.f32 %v2230_v1, %v837_v20  ;;  %v2246_v9 = vadd.f32 %v2230_v1, %v838_v49 }
  0xa5   :  { %v3017_v43 = vrot.slane %v1713_v27, %v1694_v19  ;;  %v3018_v63 = vrot.slane %v1726_v32, %v1694_v19  ;;  %v3019_v39 = vrot.slane %v1731_v33, %v1694_v19  ;;  %v3020_v41 = vrot.slane %v1736_v34, %v1694_v19 }
  0xa6   :  { %v874_v25 = vmax.f32 %v2237_v30, %v2240_v35  ;;  %v3021_v2 = vrot.slane %v1713_v27, %v1721_v31  ;;  %v3022_v47 = vrot.slane %v1726_v32, %v1721_v31  ;;  %v3023_v51 = vrot.slane %v1731_v33, %v1721_v31 }
  0xa7   :  { %v403_v44 = vmul.f32 %v2078_v42, %v3017_v43  ;;  %v404_v45 = vmul.f32 %v2078_v42, %v3018_v63  ;;  %v405_v40 = vmul.f32 %v2078_v42, %v3019_v39  ;;  %v406_v0 = vmul.f32 %v2078_v42, %v3020_v41 }
  0xa8   :  { %v506_v11 = vmul.f32 %v2140_v59, %v3021_v2  ;;  %v507_v48 = vmul.f32 %v2140_v59, %v3022_v47  ;;  %v508_v21 = vmul.f32 %v2140_v59, %v3023_v51  ;;  %v875_v26 = vmax.f32 %v874_v25, %v2243_v36 }
  0xa9   :  { %v419_v46 = vadd.f32 %v403_v44, %v316_v17  ;;  %v420_v56 = vadd.f32 %v404_v45, %v317_v23  ;;  %v421_v57 = vadd.f32 %v405_v40, %v318_v58  ;;  %v422_v24 = vadd.f32 %v406_v0, %v319_v29 }
  0xaa   :  { %v3024_v13 = vrot.slane %v1736_v34, %v1721_v31  ;;  %v3025_v8 = vrot.slane %v1713_v27, %v1744_v38  ;;  %v3026_v60 = vrot.slane %v1726_v32, %v1744_v38  ;;  %v3027_v49 = vrot.slane %v1731_v33, %v1744_v38 }
  0xab   :  { %v522_v15 = vadd.f32 %v506_v11, %v419_v46  ;;  %v523_v62 = vadd.f32 %v507_v48, %v420_v56  ;;  %v524_v20 = vadd.f32 %v508_v21, %v421_v57  ;;  %v876_v23 = vmax.f32 %v875_v26, %v2246_v9 }
  0xac   :  { %v509_v6 = vmul.f32 %v2140_v59, %v3024_v13  ;;  %v609_v14 = vmul.f32 %v2138_v37, %v3025_v8  ;;  %v610_v61 = vmul.f32 %v2138_v37, %v3026_v60  ;;  %v611_v17 = vmul.f32 %v2138_v37, %v3027_v49 }
  0xad   :  { %v3028_v29 = vrot.slane %v1736_v34, %v1744_v38  ;;  %v3029_v44 = vrot.slane %v1713_v27, %v1768_v50  ;;  %v3030_v41 = vrot.slane %v1726_v32, %v1768_v50  ;;  %877 = vmax.xlane.f32.xlu0 %v876_v23  ;;  %v3031_v2 = vrot.slane %v1731_v33, %v1768_v50 }
  0xae   :  { %v525_v58 = vadd.f32 %v509_v6, %v422_v24  ;;  %v625_v45 = vadd.f32 %v609_v14, %v522_v15  ;;  %v626_v39 = vadd.f32 %v610_v61, %v523_v62  ;;  %v627_v40 = vadd.f32 %v611_v17, %v524_v20 }
  0xaf   :  { %v612_v43 = vmul.f32 %v2138_v37, %v3028_v29  ;;  %v712_v63 = vmul.f32 %v2174_v22, %v3029_v44  ;;  %v713_v0 = vmul.f32 %v2174_v22, %v3030_v41  ;;  %v714_v11 = vmul.f32 %v2174_v22, %v3031_v2 }
  0xb0   :  { %v3032_v47 = vrot.slane %v1736_v34, %v1768_v50  ;;  %v3033_v51 = vrot.slane %v1713_v27, %v1776_v54  ;;  %v3034_v57 = vrot.slane %v1726_v32, %v1776_v54  ;;  %v3035_v26 = vrot.slane %v1731_v33, %v1776_v54 }
  0xb1   :  { %v628_v25 = vadd.f32 %v612_v43, %v525_v58  ;;  %v728_v46 = vadd.f32 %v712_v63, %v625_v45  ;;  %v729_v56 = vadd.f32 %v713_v0, %v626_v39  ;;  %v730_v6 = vadd.f32 %v714_v11, %v627_v40 }
  0xb2   :  { %v715_v48 = vmul.f32 %v2174_v22, %v3032_v47  ;;  %v815_v21 = vmul.f32 %v2192_v28, %v3033_v51  ;;  %v816_v24 = vmul.f32 %v2192_v28, %v3034_v57  ;;  %v817_v13 = vmul.f32 %v2192_v28, %v3035_v26 }
  0xb3   :  { %v3036_v14 = vrot.slane %v1736_v34, %v1776_v54  ;;  %v3037_v60 = vrot.slane %v1805_v3, %v1668_v12  ;;  %v3038_v62 = vrot.slane %v1810_v4, %v1668_v12  ;;  %v3039_v20 = vrot.slane %v1815_v5, %v1668_v12 }
  0xb4   :  { %v731_v8 = vadd.f32 %v715_v48, %v628_v25  ;;  %v831_v32 = vadd.f32 %v815_v21, %v728_v46  ;;  %v832_v15 = vadd.f32 %v816_v24, %v729_v56  ;;  %v833_v34 = vadd.f32 %v817_v13, %v730_v6 }
  0xb5   :  { %v818_v27 = vmul.f32 %v2192_v28, %v3036_v14  ;;  %v118_v61 = vmul.f32 %v2012_v53, %v3037_v60  ;;  %v119_v33 = vmul.f32 %v2012_v53, %v3038_v62  ;;  %v120_v49 = vmul.f32 %v2012_v53, %v3039_v20 }
  0xb6   :  { %v3040_v23 = vrot.slane %v1828_v10, %v1668_v12  ;;  %v3041_v29 = vrot.slane %v1805_v3, %v1685_v16  ;;  %v2353_v44 = vadd.f32 %v2230_v1, %v831_v32  ;;  %v2356_v63 = vadd.f32 %v2230_v1, %v832_v15 }
  0xb7   :  { %v834_v17 = vadd.f32 %v818_v27, %v731_v8  ;;  %v3042_v45 = vrot.slane %v1810_v4, %v1685_v16  ;;  %v3043_v40 = vrot.slane %v1815_v5, %v1685_v16  ;;  %v2367_v0 = vadd.f32 %v2230_v1, %v833_v34 }
  0xb8   :  { %v121_v58 = vmul.f32 %v2012_v53, %v3040_v23  ;;  %v205_v43 = vmul.f32 %v2080_v55, %v3041_v29  ;;  %v3044_v2 = vrot.slane %v1828_v10, %v1685_v16  ;;  %v869_v48 = vmax.f32 %v2353_v44, %v2356_v63 }
  0xb9   :  { %v206_v39 = vmul.f32 %v2080_v55, %v3042_v45  ;;  %v207_v41 = vmul.f32 %v2080_v55, %v3043_v40  ;;  %v2370_v25 = vadd.f32 %v2230_v1, %v834_v17  ;;  %v3045_v46 = vrot.slane %v1805_v3, %v1692_v18 }
  0xba   :  { %v208_v11 = vmul.f32 %v2080_v55, %v3044_v2  ;;  %v221_v47 = vadd.f32 %v205_v43, %v118_v61  ;;  %v3046_v24 = vrot.slane %v1810_v4, %v1692_v18  ;;  %v3047_v13 = vrot.slane %v1815_v5, %v1692_v18 }
  0xbb   :  { %v222_v51 = vadd.f32 %v206_v39, %v119_v33  ;;  %v223_v21 = vadd.f32 %v207_v41, %v120_v49  ;;  %v308_v56 = vmul.f32 %v2010_v52, %v3045_v46  ;;  %v3048_v8 = vrot.slane %v1828_v10, %v1692_v18 }
  0xbc   :  { %v224_v57 = vadd.f32 %v208_v11, %v121_v58  ;;  %v309_v26 = vmul.f32 %v2010_v52, %v3046_v24  ;;  %v310_v6 = vmul.f32 %v2010_v52, %v3047_v13  ;;  %v870_v27 = vmax.f32 %v869_v48, %v2367_v0 }
  0xbd   :  { %v311_v14 = vmul.f32 %v2010_v52, %v3048_v8  ;;  %v324_v60 = vadd.f32 %v308_v56, %v221_v47  ;;  %v3049_v61 = vrot.slane %v1805_v3, %v1694_v19  ;;  %v3050_v15 = vrot.slane %v1810_v4, %v1694_v19 }
  0xbe   :  { %v325_v33 = vadd.f32 %v309_v26, %v222_v51  ;;  %v326_v20 = vadd.f32 %v310_v6, %v223_v21  ;;  %v3051_v34 = vrot.slane %v1815_v5, %v1694_v19  ;;  %v871_v23 = vmax.f32 %v870_v27, %v2370_v25 }
  0xbf   :  { %v411_v32 = vmul.f32 %v2078_v42, %v3049_v61  ;;  %v412_v62 = vmul.f32 %v2078_v42, %v3050_v15  ;;  %v327_v49 = vadd.f32 %v311_v14, %v224_v57  ;;  %v3052_v58 = vrot.slane %v1828_v10, %v1694_v19 }
  0xc0   :  { %v413_v17 = vmul.f32 %v2078_v42, %v3051_v34  ;;  %v3053_v45 = vrot.slane %v1805_v3, %v1721_v31  ;;  %v3054_v2 = vrot.slane %v1810_v4, %v1721_v31  ;;  %v3055_v47 = vrot.slane %v1815_v5, %v1721_v31  ;;  %872 = vmax.xlane.f32.xlu1 %v871_v23 }
  0xc1   :  { %v414_v29 = vmul.f32 %v2078_v42, %v3052_v58  ;;  %v427_v43 = vadd.f32 %v411_v32, %v324_v60  ;;  %v428_v40 = vadd.f32 %v412_v62, %v325_v33  ;;  %v3056_v21 = vrot.slane %v1828_v10, %v1721_v31 }
  0xc2   :  { %v514_v39 = vmul.f32 %v2140_v59, %v3053_v45  ;;  %v429_v41 = vadd.f32 %v413_v17, %v326_v20  ;;  %v515_v11 = vmul.f32 %v2140_v59, %v3054_v2  ;;  %v516_v48 = vmul.f32 %v2140_v59, %v3055_v47 }
  0xc3   :  { %v430_v51 = vadd.f32 %v414_v29, %v327_v49  ;;  %v517_v46 = vmul.f32 %v2140_v59, %v3056_v21  ;;  %v3057_v57 = vrot.slane %v1805_v3, %v1744_v38  ;;  %v3058_v6 = vrot.slane %v1810_v4, %v1744_v38 }
  0xc4   :  { %v530_v56 = vadd.f32 %v514_v39, %v427_v43  ;;  %v531_v26 = vadd.f32 %v515_v11, %v428_v40  ;;  %v532_v13 = vadd.f32 %v516_v48, %v429_v41  ;;  %v3059_v14 = vrot.slane %v1815_v5, %v1744_v38 }
  0xc5   :  { %v617_v24 = vmul.f32 %v2138_v37, %v3057_v57  ;;  %v618_v8 = vmul.f32 %v2138_v37, %v3058_v6  ;;  %v533_v60 = vadd.f32 %v517_v46, %v430_v51  ;;  %v3060_v61 = vrot.slane %v1828_v10, %v1744_v38  ;;  %v3070_v6 = vld [vmem:[#allocation4_spill] sm:$0xff] }
  0xc6   :  { %v619_v27 = vmul.f32 %v2138_v37, %v3059_v14  ;;  %v3061_v62 = vrot.slane %v1805_v3, %v1768_v50  ;;  %v3062_v34 = vrot.slane %v1810_v4, %v1768_v50  ;;  %v3063_v23 = vrot.slane %v1815_v5, %v1768_v50  ;;  %v3072_v14 = vld [vmem:[#allocation5_spill] sm:$0xff] }
  0xc7   :  { %v620_v32 = vmul.f32 %v2138_v37, %v3060_v61  ;;  %v633_v15 = vadd.f32 %v617_v24, %v530_v56  ;;  %v634_v20 = vadd.f32 %v618_v8, %v531_v26  ;;  %v3064_v43 = vrot.slane %v1828_v10, %v1768_v50 }
  0xc8   :  { %v720_v33 = vmul.f32 %v2174_v22, %v3061_v62  ;;  %v635_v49 = vadd.f32 %v619_v27, %v532_v13  ;;  %v721_v17 = vmul.f32 %v2174_v22, %v3062_v34  ;;  %v722_v58 = vmul.f32 %v2174_v22, %v3063_v23 }
  0xc9   :  { %v636_v29 = vadd.f32 %v620_v32, %v533_v60  ;;  %v723_v45 = vmul.f32 %v2174_v22, %v3064_v43  ;;  %v3065_v40 = vrot.slane %v1805_v3, %v1776_v54  ;;  %v3066_v47 = vrot.slane %v1810_v4, %v1776_v54  ;;  %v3074_v32 = vld [vmem:[#allocation6_spill] sm:$0xff] }
  0xca   :  { %v736_v39 = vadd.f32 %v720_v33, %v633_v15  ;;  %v737_v2 = vadd.f32 %v721_v17, %v634_v20  ;;  %v738_v11 = vadd.f32 %v722_v58, %v635_v49  ;;  %v3067_v51 = vrot.slane %v1815_v5, %v1776_v54 }
  0xcb   :  { %v823_v41 = vmul.f32 %v2192_v28, %v3065_v40  ;;  %v824_v48 = vmul.f32 %v2192_v28, %v3066_v47  ;;  %v739_v46 = vadd.f32 %v723_v45, %v636_v29  ;;  %v3068_v56 = vrot.slane %v1828_v10, %v1776_v54 }
  0xcc   :  { %v825_v21 = vmul.f32 %v2192_v28, %v3067_v51  ;;  %v3069_v24 = vrot.slane %v1865_v7, %v1668_v12  ;;  %v3071_v8 = vrot.slane %v3070_v6, %v1668_v12  ;;  %v3073_v27 = vrot.slane %v3072_v14, %v1668_v12 }
  0xcd   :  { %v826_v3 = vmul.f32 %v2192_v28, %v3068_v56  ;;  %v839_v57 = vadd.f32 %v823_v41, %v736_v39  ;;  %v840_v4 = vadd.f32 %v824_v48, %v737_v2  ;;  %v3075_v15 = vrot.slane %v3074_v32, %v1668_v12 }
  0xce   :  { %v122_v26 = vmul.f32 %v2012_v53, %v3069_v24  ;;  %v841_v13 = vadd.f32 %v825_v21, %v738_v11  ;;  %v123_v5 = vmul.f32 %v2012_v53, %v3071_v8  ;;  %v124_v10 = vmul.f32 %v2012_v53, %v3073_v27 }
  0xcf   :  { %v842_v60 = vadd.f32 %v826_v3, %v739_v46  ;;  %v2489_v61 = vadd.f32 %v2230_v1, %v839_v57  ;;  %v125_v62 = vmul.f32 %v2012_v53, %v3075_v15  ;;  %v3076_v33 = vrot.slane %v1865_v7, %v1685_v16 }
  0xd0   :  { %v2500_v49 = vadd.f32 %v2230_v1, %v840_v4  ;;  %v2503_v34 = vadd.f32 %v2230_v1, %v841_v13  ;;  %v3077_v17 = vrot.slane %v3070_v6, %v1685_v16  ;;  %v3078_v58 = vrot.slane %v3072_v14, %v1685_v16 }
  0xd1   :  { %v209_v20 = vmul.f32 %v2080_v55, %v3076_v33  ;;  %v2514_v29 = vadd.f32 %v2230_v1, %v842_v60  ;;  %v3079_v43 = vrot.slane %v3074_v32, %v1685_v16  ;;  %v3080_v40 = vrot.slane %v1865_v7, %v1692_v18 }
  0xd2   :  { %v210_v23 = vmul.f32 %v2080_v55, %v3077_v17  ;;  %v211_v53 = vmul.f32 %v2080_v55, %v3078_v58  ;;  %v879_v2 = vmax.f32 %v2489_v61, %v2500_v49  ;;  %v3081_v48 = vrot.slane %v3070_v6, %v1692_v18 }
  0xd3   :  { %v212_v45 = vmul.f32 %v2080_v55, %v3079_v43  ;;  %v225_v39 = vadd.f32 %v209_v20, %v122_v26  ;;  %v312_v41 = vmul.f32 %v2010_v52, %v3080_v40  ;;  %v3082_v55 = vrot.slane %v3072_v14, %v1692_v18 }
  0xd4   :  { %v226_v11 = vadd.f32 %v210_v23, %v123_v5  ;;  %v227_v47 = vadd.f32 %v211_v53, %v124_v10  ;;  %v313_v51 = vmul.f32 %v2010_v52, %v3081_v48  ;;  %v3083_v56 = vrot.slane %v3074_v32, %v1692_v18 }
  0xd5   :  { %v228_v21 = vadd.f32 %v212_v45, %v125_v62  ;;  %v314_v46 = vmul.f32 %v2010_v52, %v3082_v55  ;;  %v328_v57 = vadd.f32 %v312_v41, %v225_v39  ;;  %v880_v24 = vmax.f32 %v879_v2, %v2503_v34 }
  0xd6   :  { %v315_v3 = vmul.f32 %v2010_v52, %v3083_v56  ;;  %v329_v26 = vadd.f32 %v313_v51, %v226_v11  ;;  %v3084_v4 = vrot.slane %v1865_v7, %v1694_v19  ;;  %v3085_v8 = vrot.slane %v3070_v6, %v1694_v19 }
  0xd7   :  { %v330_v27 = vadd.f32 %v314_v46, %v227_v47  ;;  %v3086_v60 = vrot.slane %v3072_v14, %v1694_v19  ;;  %v3087_v15 = vrot.slane %v3074_v32, %v1694_v19  ;;  %v881_v33 = vmax.f32 %v880_v24, %v2514_v29 }
  0xd8   :  { %v415_v13 = vmul.f32 %v2078_v42, %v3084_v4  ;;  %v416_v5 = vmul.f32 %v2078_v42, %v3085_v8  ;;  %v331_v10 = vadd.f32 %v315_v3, %v228_v21  ;;  %v3088_v23 = vrot.slane %v1865_v7, %v1721_v31 }
  0xd9   :  { %v417_v52 = vmul.f32 %v2078_v42, %v3086_v60  ;;  %v418_v62 = vmul.f32 %v2078_v42, %v3087_v15  ;;  %v3089_v45 = vrot.slane %v3070_v6, %v1721_v31  ;;  %v3090_v19 = vrot.slane %v3072_v14, %v1721_v31  ;;  %882 = vmax.xlane.f32.xlu0 %v881_v33 }
  0xda   :  { %v431_v20 = vadd.f32 %v415_v13, %v328_v57  ;;  %v432_v17 = vadd.f32 %v416_v5, %v329_v26  ;;  %v518_v58 = vmul.f32 %v2140_v59, %v3088_v23  ;;  %v3091_v40 = vrot.slane %v3074_v32, %v1721_v31 }
  0xdb   :  { %v433_v53 = vadd.f32 %v417_v52, %v330_v27  ;;  %v434_v43 = vadd.f32 %v418_v62, %v331_v10  ;;  %v519_v39 = vmul.f32 %v2140_v59, %v3089_v45  ;;  %v520_v42 = vmul.f32 %v2140_v59, %v3090_v19 }
  0xdc   :  { %v521_v41 = vmul.f32 %v2140_v59, %v3091_v40  ;;  %v534_v2 = vadd.f32 %v518_v58, %v431_v20  ;;  %v3092_v11 = vrot.slane %v1865_v7, %v1744_v38  ;;  %v809_v48 = vrot.slane %v3074_v32, %v1776_v54 }
  0xdd   :  { %v535_v51 = vadd.f32 %v519_v39, %v432_v17  ;;  %v536_v21 = vadd.f32 %v520_v42, %v433_v53  ;;  %v3093_v55 = vrot.slane %v3070_v6, %v1744_v38  ;;  %v3094_v56 = vrot.slane %v3072_v14, %v1744_v38 }
  0xde   :  { %v621_v47 = vmul.f32 %v2138_v37, %v3092_v11  ;;  %v537_v3 = vadd.f32 %v521_v41, %v434_v43  ;;  %v3095_v57 = vrot.slane %v3074_v32, %v1744_v38  ;;  %v3096_v4 = vrot.slane %v1865_v7, %v1768_v50 }
  0xdf   :  { %v622_v46 = vmul.f32 %v2138_v37, %v3093_v55  ;;  %v623_v59 = vmul.f32 %v2138_v37, %v3094_v56  ;;  %v3097_v27 = vrot.slane %v3070_v6, %v1768_v50  ;;  %v3098_v60 = vrot.slane %v3072_v14, %v1768_v50 }
  0xe0   :  { %v624_v24 = vmul.f32 %v2138_v37, %v3095_v57  ;;  %v637_v26 = vadd.f32 %v621_v47, %v534_v2  ;;  %v724_v13 = vmul.f32 %v2174_v22, %v3096_v4  ;;  %v3099_v37 = vrot.slane %v3074_v32, %v1768_v50 }
  0xe1   :  { %v638_v8 = vadd.f32 %v622_v46, %v535_v51  ;;  %v639_v5 = vadd.f32 %v623_v59, %v536_v21  ;;  %v725_v10 = vmul.f32 %v2174_v22, %v3097_v27  ;;  %v726_v52 = vmul.f32 %v2174_v22, %v3098_v60 }
  0xe2   :  { %v640_v15 = vadd.f32 %v624_v24, %v537_v3  ;;  %v727_v62 = vmul.f32 %v2174_v22, %v3099_v37  ;;  %v740_v33 = vadd.f32 %v724_v13, %v637_v26  ;;  %v3100_v20 = vrot.slane %v1865_v7, %v1776_v54  ;;  %v2642_v3 = vld [vmem:[%s2987_s2 + $0x10] sm:$0x77] }
  0xe3   :  { %v741_v23 = vadd.f32 %v725_v10, %v638_v8  ;;  %v742_v58 = vadd.f32 %v726_v52, %v639_v5  ;;  %v3101_v53 = vrot.slane %v3070_v6, %v1776_v54  ;;  %v3102_v45 = vrot.slane %v3072_v14, %v1776_v54 }
  0xe4   :  { %v827_v17 = vmul.f32 %v2192_v28, %v3100_v20  ;;  %v743_v39 = vadd.f32 %v727_v62, %v640_v15  ;;  %v830_v19 = vmul.f32 %v2192_v28, %v809_v48  ;;  %v1352_v57 = vrot.slane %v2642_v3, %v1692_v18 }
  0xe5   :  { %v828_v43 = vmul.f32 %v2192_v28, %v3101_v53  ;;  %v829_v32 = vmul.f32 %v2192_v28, %v3102_v45  ;;  %v1356_v13 = vrot.slane %v2642_v3, %v1768_v50 }
  0xe6   :  { %v843_v22 = vadd.f32 %v827_v17, %v740_v33  ;;  %v846_v41 = vadd.f32 %v830_v19, %v743_v39 }
  0xe7   :  { %v844_v42 = vadd.f32 %v828_v43, %v741_v23  ;;  %v845_v7 = vadd.f32 %v829_v32, %v742_v58  ;;  %v1436_v58 = vrot.slane %v1356_v13, %v1692_v18 }
  0xe8   :  { %v2620_v40 = vadd.f32 %v2230_v1, %v843_v22  ;;  %v2631_v14 = vadd.f32 %v2230_v1, %v846_v41 }
  0xe9   :  { %v2623_v2 = vadd.f32 %v2230_v1, %v844_v42  ;;  %v2626_v6 = vadd.f32 %v2230_v1, %v845_v7 }
  0xeb   :  { %v884_v54 = vmax.f32 %v2620_v40, %v2623_v2 }
  0xed   :  { %v885_v28 = vmax.f32 %v884_v54, %v2626_v6 }
  0xef   :  { %v886_v11 = vmax.f32 %v885_v28, %v2631_v14 }
  0xf1   :  { %887 = vmax.xlane.f32.xlu1 %v886_v11 }
 0x13a   :  { %v878_v47 = vpop.xlane.xlu0 %877 }
 0x13b   :  { %v893_v48 = vsub.f32 %v2237_v30, %v878_v47  ;;  %v894_v51 = vsub.f32 %v2240_v35, %v878_v47  ;;  %v895_v21 = vsub.f32 %v2243_v36, %v878_v47  ;;  %v896_v55 = vsub.f32 %v2246_v9, %v878_v47  ;;  %v2647_v30 = vld [vmem:[%s2987_s2 + $0x18] sm:$0x77] }
 0x13c   :  { %v1172_v35 = vrot.slane %v2642_v3, %v1685_v16  ;;  %v1176_v36 = vrot.slane %v2642_v3, %v1744_v38  ;;  %v1180_v9 = vrot.slane %v2647_v30, %v1685_v16  ;;  %v1184_v26 = vrot.slane %v2647_v30, %v1744_v38 }
 0x13d   :  { %v913_v46 = vmul.f32 1.442695, %v893_v48  ;;  %v915_v56 = vmul.f32 1.442695, %v894_v51  ;;  %v917_v59 = vmul.f32 1.442695, %v895_v21  ;;  %v1360_v37 = vrot.slane %v2647_v30, %v1692_v18 }
 0x13e   :  { %v919_v1 = vmul.f32 1.442695, %v896_v55  ;;  %v1252_v4 = vrot.slane %v1172_v35, %v1685_v16  ;;  %v1256_v10 = vrot.slane %v1176_v36, %v1685_v16  ;;  %v1260_v15 = vrot.slane %v1180_v9, %v1685_v16 }
 0x13f   :  { %1563 = vpow2.f32 %v913_v46  ;;  %v1264_v53 = vrot.slane %v1184_v26, %v1685_v16  ;;  %v1440_v22 = vrot.slane %v1360_v37, %v1692_v18 }
 0x140   :  { %1565 = vpow2.f32 %v915_v56 }
 0x141   :  { %1567 = vpow2.f32 %v917_v59 }
 0x142   :  { %1569 = vpow2.f32 %v919_v1 }
 0x149   :  { %v2666_v60 = vpop.eup %1563 }
 0x14a   :  { %v2672_v62 = vpop.eup %1565  ;;  %v1301_v23 = vmul.f32 %v2666_v60, %v1252_v4  ;;  %v2715_v4 = vld [vmem:[%s2987_s2] sm:$0x77] }
 0x14b   :  { %v1302_v43 = vmul.f32 %v2672_v62, %v1256_v10  ;;  %v1482_v28 = vmul.f32 %v2672_v62, %v1436_v58  ;;  %v1000_v58 = vrot.slane %v2647_v30, %v1668_v12 }
 0x14d   :  { %v873_v24 = vpop.xlane.xlu1 %872  ;;  %v1318_v42 = vadd.f32 %v1302_v43, %v1301_v23  ;;  %v1004_v43 = vrot.slane %v2647_v30, %v1721_v31 }
 0x14e   :  { %v889_v8 = vsub.f32 %v2353_v44, %v873_v24  ;;  %v890_v5 = vsub.f32 %v2356_v63, %v873_v24  ;;  %v891_v27 = vsub.f32 %v2367_v0, %v873_v24  ;;  %v892_v52 = vsub.f32 %v2370_v25, %v873_v24  ;;  %v2677_v0 = vpop.eup %1567 }
 0x14f   :  { %v1364_v44 = vrot.slane %v2647_v30, %v1768_v50  ;;  %v1432_v63 = vrot.slane %v1352_v57, %v1692_v18  ;;  %v942_v25 = vadd.f32 %v2672_v62, %v2666_v60  ;;  %v2685_v45 = vpop.eup %1569  ;;  %v1303_v19 = vmul.f32 %v2677_v0, %v1260_v15 }
 0x150   :  { %v905_v33 = vmul.f32 1.442695, %v889_v8  ;;  %v907_v20 = vmul.f32 1.442695, %v890_v5  ;;  %v909_v17 = vmul.f32 1.442695, %v891_v27  ;;  %v1304_v11 = vmul.f32 %v2685_v45, %v1264_v53 }
 0x151   :  { %v911_v32 = vmul.f32 1.442695, %v892_v52  ;;  %v943_v39 = vadd.f32 %v2677_v0, %v942_v25  ;;  %v1481_v7 = vmul.f32 %v2666_v60, %v1432_v63  ;;  %v1444_v54 = vrot.slane %v1364_v44, %v1692_v18  ;;  %v2722_v5 = vld [vmem:[%s2987_s2 + $0x8] sm:$0x77]  ;;  %v2740_v44 = vld [vmem:[%s2987_s2 + $0x20] sm:$0x77] }
 0x152   :  { %1571 = vpow2.f32 %v905_v33  ;;  %v1319_v47 = vadd.f32 %v1318_v42, %v1303_v19  ;;  %v1483_v48 = vmul.f32 %v2677_v0, %v1440_v22  ;;  %v976_v52 = vrot.slane %v2715_v4, %v1668_v12 }
 0x153   :  { %1573 = vpow2.f32 %v907_v20  ;;  %v944_v41 = vadd.f32 %v2685_v45, %v943_v39  ;;  %v1498_v51 = vadd.f32 %v1482_v28, %v1481_v7  ;;  %v1484_v55 = vmul.f32 %v2685_v45, %v1444_v54  ;;  %v2774_v7 = vld [vmem:[%s2987_s2 + $0x30] sm:$0x77] }
 0x154   :  { %1575 = vpow2.f32 %v909_v17  ;;  %v2696_v21 = vadd.f32 %v1319_v47, %v1304_v11  ;;  %v984_v15 = vrot.slane %v2722_v5, %v1668_v12  ;;  %v988_v33 = vrot.slane %v2722_v5, %v1721_v31  ;;  %v2747_v17 = vld [vmem:[%s2987_s2 + $0x28] sm:$0x77] }
 0x155   :  { %1577 = vpow2.f32 %v911_v32  ;;  %945 = vadd.xlane.f32.xlu1 %v944_v41  ;;  %v1499_v46 = vadd.f32 %v1498_v51, %v1483_v48  ;;  %v992_v20 = vrot.slane %v2642_v3, %v1668_v12  ;;  %v996_v63 = vrot.slane %v2642_v3, %v1721_v31  ;;  %v2779_v41 = vld [vmem:[%s2987_s2 + $0x38] sm:$0x77] }
 0x156   :  { %v1056_v25 = vrot.slane %v976_v52, %v1668_v12  ;;  %v1064_v53 = vrot.slane %v984_v15, %v1668_v12  ;;  %v1008_v3 = vrot.slane %v2740_v44, %v1668_v12  ;;  %v1012_v32 = vrot.slane %v2740_v44, %v1721_v31 }
 0x157   :  { %v2699_v56 = vadd.f32 %v1499_v46, %v1484_v55  ;;  %v1068_v39 = vrot.slane %v988_v33, %v1668_v12  ;;  %v2762_v22 = vrot.slane %v992_v20, %v1668_v12  ;;  %v1016_v19 = vrot.slane %v2747_v17, %v1668_v12 }
 0x158   :  { %v2767_v42 = vrot.slane %v996_v63, %v1668_v12  ;;  %v1020_v30 = vrot.slane %v2747_v17, %v1721_v31  ;;  %v1156_v54 = vrot.slane %v2715_v4, %v1685_v16  ;;  %v1160_v28 = vrot.slane %v2715_v4, %v1744_v38 }
 0x159   :  { %v1164_v48 = vrot.slane %v2722_v5, %v1685_v16  ;;  %v1188_v51 = vrot.slane %v2740_v44, %v1685_v16  ;;  %v2792_v55 = vrot.slane %v1000_v58, %v1668_v12  ;;  %v2795_v46 = vrot.slane %v1004_v43, %v1668_v12 }
 0x15a   :  { %v1336_v58 = vrot.slane %v2715_v4, %v1692_v18 }
 0x15b   :  { %v1244_v15 = vrot.slane %v1164_v48, %v1685_v16  ;;  %v1268_v33 = vrot.slane %v1188_v51, %v1685_v16 }
 0x15c   :  { %v2701_v59 = vpop.eup %1571 }
 0x15d   :  { %v2703_v1 = vpop.eup %1573  ;;  %v1117_v11 = vmul.f32 %v2701_v59, %v1056_v25 }
 0x15e   :  { %v937_v36 = vadd.f32 %v2703_v1, %v2701_v59  ;;  %v2707_v9 = vpop.eup %1575 }
 0x15f   :  { %v2724_v27 = vpop.eup %1577 }
 0x160   :  { %v938_v8 = vadd.f32 %v2707_v9, %v937_v36  ;;  %v1092_v36 = vrot.slane %v1012_v32, %v1668_v12 }
 0x166   :  { %v883_v35 = vpop.xlane.xlu0 %882 }
 0x167   :  { %v897_v57 = vsub.f32 %v2489_v61, %v883_v35  ;;  %v898_v24 = vsub.f32 %v2500_v49, %v883_v35  ;;  %v899_v26 = vsub.f32 %v2503_v34, %v883_v35  ;;  %v900_v13 = vsub.f32 %v2514_v29, %v883_v35 }
 0x168   :  { %v939_v34 = vadd.f32 %v2724_v27, %v938_v8  ;;  %v980_v29 = vrot.slane %v2715_v4, %v1721_v31  ;;  %v1088_v35 = vrot.slane %v1008_v3, %v1668_v12 }
 0x169   :  { %v921_v61 = vmul.f32 1.442695, %v897_v57  ;;  %v923_v49 = vmul.f32 1.442695, %v898_v24  ;;  %v925_v10 = vmul.f32 1.442695, %v899_v26  ;;  %v1096_v57 = vrot.slane %v1016_v19, %v1668_v12 }
 0x16a   :  { %v927_v37 = vmul.f32 1.442695, %v900_v13  ;;  %940 = vadd.xlane.f32.xlu0 %v939_v34  ;;  %v1060_v23 = vrot.slane %v980_v29, %v1668_v12  ;;  %v1024_v24 = vrot.slane %v2774_v7, %v1668_v12  ;;  %v1028_v26 = vrot.slane %v2774_v7, %v1721_v31 }
 0x16b   :  { %1579 = vpow2.f32 %v921_v61  ;;  %v1032_v13 = vrot.slane %v2779_v41, %v1668_v12  ;;  %v1100_v61 = vrot.slane %v1020_v30, %v1668_v12  ;;  %v1240_v34 = vrot.slane %v1160_v28, %v1685_v16 }
 0x16c   :  { %1581 = vpow2.f32 %v923_v49  ;;  %v1118_v47 = vmul.f32 %v2703_v1, %v1060_v23  ;;  %v1168_v49 = vrot.slane %v2722_v5, %v1744_v38  ;;  %v1119_v30 = vmul.f32 %v2707_v9, %v1064_v53 }
 0x16d   :  { %1583 = vpow2.f32 %v925_v10  ;;  %v1236_v10 = vrot.slane %v1156_v54, %v1685_v16 }
 0x16e   :  { %1585 = vpow2.f32 %v927_v37  ;;  %v1133_v29 = vadd.f32 %v1118_v47, %v1117_v11  ;;  %v1192_v37 = vrot.slane %v2740_v44, %v1744_v38  ;;  %v1340_v47 = vrot.slane %v2715_v4, %v1768_v50 }
 0x16f   :  { %v1297_v11 = vmul.f32 %v2701_v59, %v1236_v10  ;;  %v1196_v10 = vrot.slane %v2747_v17, %v1685_v16  ;;  %v1416_v4 = vrot.slane %v1336_v58, %v1692_v18 }
 0x175   :  { %v2806_v8 = vpop.eup %1579 }
 0x176   :  { %v2813_v52 = vpop.eup %1581  ;;  %v1125_v25 = vmul.f32 %v2806_v8, %v1088_v35 }
 0x177   :  { %v947_v63 = vadd.f32 %v2813_v52, %v2806_v8  ;;  %v1126_v23 = vmul.f32 %v2813_v52, %v1092_v36  ;;  %v2825_v43 = vpop.eup %1583 }
 0x178   :  { %v2836_v48 = vpop.eup %1585 }
 0x179   :  { %v948_v28 = vadd.f32 %v2825_v43, %v947_v63  ;;  %v1143_v53 = vadd.f32 %v1126_v23, %v1125_v25  ;;  %v1305_v23 = vmul.f32 %v2806_v8, %v1268_v33  ;;  %v1344_v33 = vrot.slane %v2722_v5, %v1692_v18 }
 0x17e   :  { %v888_v20 = vpop.xlane.xlu1 %887 }
 0x17f   :  { %v901_v3 = vsub.f32 %v2620_v40, %v888_v20  ;;  %v902_v32 = vsub.f32 %v2623_v2, %v888_v20  ;;  %v903_v19 = vsub.f32 %v2626_v6, %v888_v20  ;;  %v904_v54 = vsub.f32 %v2631_v14, %v888_v20 }
 0x180   :  { %v1134_v40 = vadd.f32 %v1133_v29, %v1119_v30  ;;  %v1298_v2 = vmul.f32 %v2703_v1, %v1240_v34  ;;  %v949_v6 = vadd.f32 %v2836_v48, %v948_v28  ;;  %v1272_v14 = vrot.slane %v1192_v37, %v1685_v16 }
 0x181   :  { %v929_v51 = vmul.f32 1.442695, %v901_v3  ;;  %v931_v35 = vmul.f32 1.442695, %v902_v32  ;;  %v933_v36 = vmul.f32 1.442695, %v903_v19  ;;  %v1120_v20 = vmul.f32 %v2724_v27, %v1068_v39 }
 0x182   :  { %v935_v63 = vmul.f32 1.442695, %v904_v54  ;;  %950 = vadd.xlane.f32.xlu0 %v949_v6  ;;  %v1127_v29 = vmul.f32 %v2825_v43, %v1096_v57  ;;  %v1420_v34 = vrot.slane %v1340_v47, %v1692_v18  ;;  %v1313_v32 = vadd.f32 %v1298_v2, %v1297_v11 }
 0x183   :  { %1587 = vpow2.f32 %v929_v51  ;;  %v1135_v3 = vadd.f32 %v1134_v40, %v1120_v20  ;;  %v1368_v37 = vrot.slane %v2740_v44, %v1692_v18  ;;  %v1372_v39 = vrot.slane %v2740_v44, %v1768_v50 }
 0x184   :  { %1589 = vpow2.f32 %v931_v35  ;;  %v1144_v25 = vadd.f32 %v1143_v53, %v1127_v29  ;;  %v1306_v58 = vmul.f32 %v2813_v52, %v1272_v14  ;;  %v1104_v19 = vrot.slane %v1024_v24, %v1668_v12 }
 0x185   :  { %1591 = vpow2.f32 %v933_v36  ;;  %v1248_v57 = vrot.slane %v1168_v49, %v1685_v16  ;;  %v1200_v30 = vrot.slane %v2747_v17, %v1744_v38  ;;  %v1276_v54 = vrot.slane %v1196_v10, %v1685_v16 }
 0x186   :  { %1593 = vpow2.f32 %v935_v63  ;;  %1136 = vadd.xlane.f32.xlu0 %v1135_v3  ;;  %v1128_v28 = vmul.f32 %v2836_v48, %v1100_v61  ;;  %v1299_v44 = vmul.f32 %v2707_v9, %v1244_v15  ;;  %v1348_v11 = vrot.slane %v2722_v5, %v1768_v50 }
 0x187   :  { %v1477_v24 = vmul.f32 %v2701_v59, %v1416_v4  ;;  %v1478_v49 = vmul.f32 %v2703_v1, %v1420_v34  ;;  %v1448_v47 = vrot.slane %v1368_v37, %v1692_v18  ;;  %v1323_v40 = vadd.f32 %v1306_v58, %v1305_v23 }
 0x188   :  { %v1145_v51 = vadd.f32 %v1144_v25, %v1128_v28  ;;  %v1314_v35 = vadd.f32 %v1313_v32, %v1299_v44  ;;  %v1452_v2 = vrot.slane %v1372_v39, %v1692_v18  ;;  %v1121_v61 = vmul.f32 %v2666_v60, %v2762_v22 }
 0x189   :  { %v1122_v15 = vmul.f32 %v2672_v62, %v2767_v42  ;;  %v1108_v59 = vrot.slane %v1028_v26, %v1668_v12  ;;  %v1280_v1 = vrot.slane %v1200_v30, %v1685_v16  ;;  %v1300_v5 = vmul.f32 %v2724_v27, %v1248_v57 }
 0x18a   :  { %1146 = vadd.xlane.f32.xlu0 %v1145_v51  ;;  %v1307_v36 = vmul.f32 %v2825_v43, %v1276_v54  ;;  %v1424_v6 = vrot.slane %v1344_v33, %v1692_v18  ;;  %v1376_v60 = vrot.slane %v2747_v17, %v1692_v18  ;;  %v1204_v62 = vrot.slane %v2774_v7, %v1685_v16 }
 0x18b   :  { %v1208_v42 = vrot.slane %v2774_v7, %v1744_v38  ;;  %v1428_v26 = vrot.slane %v1348_v11, %v1692_v18  ;;  %v1493_v53 = vadd.f32 %v1478_v49, %v1477_v24  ;;  %v1315_v20 = vadd.f32 %v1314_v35, %v1300_v5 }
 0x18c   :  { %v1324_v10 = vadd.f32 %v1323_v40, %v1307_v36  ;;  %v1485_v4 = vmul.f32 %v2806_v8, %v1448_v47  ;;  %v1486_v63 = vmul.f32 %v2813_v52, %v1452_v2  ;;  %v1138_v34 = vadd.f32 %v1122_v15, %v1121_v61 }
 0x18d   :  { %v2882_v22 = vpop.eup %1587  ;;  %v1308_v39 = vmul.f32 %v2836_v48, %v1280_v1  ;;  %v1479_v25 = vmul.f32 %v2707_v9, %v1424_v6  ;;  %v1380_v8 = vrot.slane %v2747_v17, %v1768_v50  ;;  %v1456_v52 = vrot.slane %v1376_v60, %v1692_v18 }
 0x18e   :  { %v2889_v14 = vpop.eup %1589  ;;  %v1129_v3 = vmul.f32 %v2882_v22, %v1104_v19  ;;  %1316 = vadd.xlane.f32.xlu0 %v1315_v20  ;;  %v1123_v58 = vmul.f32 %v2677_v0, %v2792_v55  ;;  %v1036_v19 = vrot.slane %v2779_v41, %v1721_v31  ;;  %v1112_v57 = vrot.slane %v1032_v13, %v1668_v12 }
 0x18f   :  { %v952_v29 = vadd.f32 %v2889_v14, %v2882_v22  ;;  %v1130_v32 = vmul.f32 %v2889_v14, %v1108_v59  ;;  %v2897_v37 = vpop.eup %1591  ;;  %v1325_v9 = vadd.f32 %v1324_v10, %v1308_v39  ;;  %v1284_v54 = vrot.slane %v1204_v62, %v1685_v16 }
 0x190   :  { %v1594_v30 = vpop.eup %1593  ;;  %v1494_v17 = vadd.f32 %v1493_v53, %v1479_v25  ;;  %v1503_v28 = vadd.f32 %v1486_v63, %v1485_v4  ;;  %v1139_v33 = vadd.f32 %v1138_v34, %v1123_v58  ;;  %v1288_v24 = vrot.slane %v1208_v42, %v1685_v16 }
 0x191   :  { %v953_v23 = vadd.f32 %v2897_v37, %v952_v29  ;;  %v1148_v11 = vadd.f32 %v1130_v32, %v1129_v3  ;;  %v1480_v0 = vmul.f32 %v2724_v27, %v1428_v26  ;;  %v1460_v31 = vrot.slane %v1380_v8, %v1692_v18 }
 0x192   :  { %1326 = vadd.xlane.f32.xlu0 %v1325_v9  ;;  %v1487_v55 = vmul.f32 %v2825_v43, %v1456_v52  ;;  %v1124_v13 = vmul.f32 %v2685_v45, %v2795_v46  ;;  %v1116_v49 = vrot.slane %v1036_v19, %v1668_v12  ;;  %v1131_v47 = vmul.f32 %v2897_v37, %v1112_v57 }
 0x193   :  { %v954_v44 = vadd.f32 %v1594_v30, %v953_v23  ;;  %v1212_v51 = vrot.slane %v2779_v41, %v1685_v16  ;;  %v1495_v35 = vadd.f32 %v1494_v17, %v1480_v0  ;;  %v1384_v27 = vrot.slane %v2774_v7, %v1692_v18 }
 0x194   :  { %v1504_v40 = vadd.f32 %v1503_v28, %v1487_v55  ;;  %v1388_v2 = vrot.slane %v2774_v7, %v1768_v50  ;;  %v1140_v43 = vadd.f32 %v1139_v33, %v1124_v13  ;;  %v1149_v61 = vadd.f32 %v1148_v11, %v1131_v47 }
 0x195   :  { %955 = vadd.xlane.f32.xlu1 %v954_v44  ;;  %v1309_v15 = vmul.f32 %v2882_v22, %v1284_v54  ;;  %v1310_v45 = vmul.f32 %v2889_v14, %v1288_v24  ;;  %v1488_v12 = vmul.f32 %v2836_v48, %v1460_v31  ;;  %v1132_v46 = vmul.f32 %v1594_v30, %v1116_v49 }
 0x196   :  { %1496 = vadd.xlane.f32.xlu0 %v1495_v35  ;;  %v1216_v59 = vrot.slane %v2779_v41, %v1744_v38  ;;  %v1292_v1 = vrot.slane %v1212_v51, %v1685_v16  ;;  %v1464_v7 = vrot.slane %v1384_v27, %v1692_v18  ;;  %v1468_v60 = vrot.slane %v1388_v2, %v1692_v18 }
 0x197   :  { %v1505_v5 = vadd.f32 %v1504_v40, %v1488_v12  ;;  %v1150_v36 = vadd.f32 %v1149_v61, %v1132_v46  ;;  %v1328_v6 = vadd.f32 %v1310_v45, %v1309_v15  ;;  %v1392_v42 = vrot.slane %v2779_v41, %v1692_v18 }
 0x198   :  { %v1296_v62 = vrot.slane %v1216_v59, %v1685_v16  ;;  %v1311_v48 = vmul.f32 %v2897_v37, %v1292_v1  ;;  %v1489_v38 = vmul.f32 %v2882_v22, %v1464_v7  ;;  %v1490_v53 = vmul.f32 %v2889_v14, %v1468_v60 }
 0x199   :  { %1141 = vadd.xlane.f32.xlu1 %v1140_v43  ;;  %v1396_v10 = vrot.slane %v2779_v41, %v1768_v50  ;;  %v1472_v4 = vrot.slane %v1392_v42, %v1692_v18 }
 0x19a   :  { %1506 = vadd.xlane.f32.xlu0 %v1505_v5  ;;  %v1329_v26 = vadd.f32 %v1328_v6, %v1311_v48  ;;  %v1312_v20 = vmul.f32 %v1594_v30, %v1296_v62  ;;  %v1508_v16 = vadd.f32 %v1490_v53, %v1489_v38 }
 0x19b   :  { %v1476_v29 = vrot.slane %v1396_v10, %v1692_v18  ;;  %v1491_v34 = vmul.f32 %v2897_v37, %v1472_v4 }
 0x19c   :  { %v1330_v63 = vadd.f32 %v1329_v26, %v1312_v20 }
 0x19d   :  { %1151 = vadd.xlane.f32.xlu1 %v1150_v36  ;;  %v1509_v3 = vadd.f32 %v1508_v16, %v1491_v34  ;;  %v1492_v22 = vmul.f32 %v1594_v30, %v1476_v29 }
 0x19f   :  { %v1510_v14 = vadd.f32 %v1509_v3, %v1492_v22 }
 0x1a1   :  { %1321 = vadd.xlane.f32.xlu1 %v2696_v21 }
 0x1a5   :  { %1331 = vadd.xlane.f32.xlu1 %v1330_v63 }
 0x1a9   :  { %1501 = vadd.xlane.f32.xlu1 %v2699_v56 }
 0x1ad   :  { %1511 = vadd.xlane.f32.xlu1 %v1510_v14 }
 0x1e2   :  { %v946_v50 = vpop.xlane.xlu1 %945 }
 0x1f7   :  { %v941_v21 = vpop.xlane.xlu0 %940 }
 0x1f8   :  { %1595 = vrcp.f32 %v941_v21 }
 0x202   :  { %v1596_v23 = vpop.eup %1595 }
 0x20f   :  { %v951_v32 = vpop.xlane.xlu0 %950 }
 0x210   :  { %1597 = vrcp.f32 %v951_v32 }
 0x211   :  { %1599 = vrcp.f32 %v946_v50 }
 0x213   :  { %v1137_v39 = vpop.xlane.xlu0 %1136 }
 0x217   :  { %v1147_v25 = vpop.xlane.xlu0 %1146 }
 0x21a   :  { %v1598_v9 = vpop.eup %1597 }
 0x21b   :  { %v1317_v41 = vpop.xlane.xlu0 %1316  ;;  %v1600_v0 = vpop.eup %1599 }
 0x21c   :  { %v1514_v18 = vsel %vm1513_vm0, %v1137_v39, %v1317_v41 }
 0x21f   :  { %v1327_v8 = vpop.xlane.xlu0 %1326 }
 0x220   :  { %v1516_v57 = vsel %vm1513_vm0, %v1147_v25, %v1327_v8 }
 0x222   :  { %v956_v52 = vpop.xlane.xlu1 %955 }
 0x223   :  { %v1497_v37 = vpop.xlane.xlu0 %1496  ;;  %1601 = vrcp.f32 %v956_v52 }
 0x224   :  { %v1519_v58 = vsel %vm1518_vm1, %v1514_v18, %v1497_v37 }
 0x225   :  { %v1524_v19 = vmul.f32 %v1596_v23, %v1519_v58 }
 0x226   :  { %v1142_v56 = vpop.xlane.xlu1 %1141 }
 0x227   :  { %1532 = vst.msk [vmem:[%s2990_s5] sm:$0xff] %vm1531_vm2, %v1524_v19  ;;  %v1507_v30 = vpop.xlane.xlu0 %1506 }
 0x228   :  { %v1521_v17 = vsel %vm1518_vm1, %v1516_v57, %v1507_v30 }
 0x229   :  { %v1528_v28 = vmul.f32 %v1598_v9, %v1521_v17 }
 0x22a   :  { %v1152_v54 = vpop.xlane.xlu1 %1151 }
 0x22b   :  { %1534 = vst.msk [vmem:[%s2990_s5 + $0x10] sm:$0xff] %vm1531_vm2, %v1528_v28 }
 0x22d   :  { %v1602_v47 = vpop.eup %1601 }
 0x22e   :  { %v1322_v44 = vpop.xlane.xlu1 %1321 }
 0x22f   :  { %v1515_v11 = vsel %vm1513_vm0, %v1142_v56, %v1322_v44 }
 0x232   :  { %v1332_v33 = vpop.xlane.xlu1 %1331 }
 0x233   :  { %v1517_v13 = vsel %vm1513_vm0, %v1152_v54, %v1332_v33 }
 0x236   :  { %v1502_v24 = vpop.xlane.xlu1 %1501 }
 0x237   :  { %v1520_v31 = vsel %vm1518_vm1, %v1515_v11, %v1502_v24 }
 0x238   :  { %v1526_v55 = vmul.f32 %v1600_v0, %v1520_v31 }
 0x23a   :  { %1533 = vst.msk [vmem:[%s2990_s5 + $0x8] sm:$0xff] %vm1531_vm2, %v1526_v55  ;;  %v1512_v49 = vpop.xlane.xlu1 %1511 }
 0x23b   :  { %v1522_v51 = vsel %vm1518_vm1, %v1517_v13, %v1512_v49 }
 0x23c   :  { %v1530_v35 = vmul.f32 %v1602_v47, %v1522_v51 }
 0x23e   :  { %1535 = vst.msk [vmem:[%s2990_s5 + $0x18] sm:$0xff] %vm1531_vm2, %v1530_v35 }
 0x23f PF:  { %s1536_s12 = sld [smem:[#allocation3]] }
 0x245   :  { %p1558_p1 = scmp.ne.s32.totalorder %s1536_s12, 0 }
 0x246   :  { %vm1541_vm3 = vcmask (!%p1558_p1), 23552   ;;  %v1604_v40 = vmov (!%p1558_p1), 0.0  }
 0x247   :  { %1540 = sbr.rel (%p1558_p1) target bundleno = 590 (0x24e), region = 25  ;;  %1542 = vst.msk [vmem:[%s2990_s5] sm:$0xff] (!%p1558_p1), %vm1541_vm3, %v1604_v40  ;;  %1543 = vst.msk [vmem:[%s2990_s5 + $0x8] sm:$0xff] (!%p1558_p1), %vm1541_vm3, %v1604_v40 }
 0x248   :  { %1544 = vst.msk [vmem:[%s2990_s5 + $0x10] sm:$0xff] (!%p1558_p1), %vm1541_vm3, %v1604_v40  ;;  %1545 = vst.msk [vmem:[%s2990_s5 + $0x18] sm:$0xff] (!%p1558_p1), %vm1541_vm3, %v1604_v40 }
 0x24e PF:  {}

</bundles_post_ra>
